<compile_context>
chip_gen: v5e
topology: v5e:2x2
jax: 0.10.0
libtpu: 0.0.40
codegen_flags: <defaults>
</compile_context>

<pallas_src>
import functools

import jax
import jax.numpy as jnp
from jax.experimental import pallas as pl
from jax.experimental.pallas import tpu as pltpu


def _round_up(x, m):
    return (x + m - 1) // m * m


def quad_reg_kernel(x_ref, w_ref, b_ref, o_ref, acc_ref, *, compute_dtype):
    k = pl.program_id(2)
    nk = pl.num_programs(2)

    @pl.when(k == 0)
    def _():
        acc_ref[...] = jnp.zeros_like(acc_ref)

    x = x_ref[...]                                     # (tm, D_pad) f32, resident
    # Per-row scale for this reduction group:
    #   k == 0   -> 1.0        (linear features)
    #   k == i+1 -> x[:, i]    (quadratic group i)
    # Extract column k-1 with a one-hot lane mask + lane reduce (XLU slot,
    # cheap) instead of D Python-unrolled broadcasts.
    lane = jax.lax.broadcasted_iota(jnp.int32, x.shape, dimension=1)
    col = jnp.sum(jnp.where(lane == (k - 1), x, 0.0), axis=1, keepdims=True)
    scale = jnp.where(k == 0, jnp.float32(1.0), col)   # (tm, 1)
    feat = (x * scale).astype(compute_dtype)           # on-the-fly feature block

    acc_ref[...] += jnp.dot(
        feat,
        w_ref[...].astype(compute_dtype),
        preferred_element_type=jnp.float32,
    )

    @pl.when(k == nk - 1)
    def _():
        # Bias added once per output tile from a resident (1, tn) block.
        o_ref[...] = (acc_ref[...] + b_ref[...]).astype(o_ref.dtype)


def quad_regression(x, w, b, *, block_m=None, block_n=None,
                    compute_dtype=jnp.float32):
    """x: (B, D) f32, w: (D + D*D, O) f32, b: (O,) f32 -> (B, O) f32."""
    x = jnp.asarray(x, jnp.float32)
    w = jnp.asarray(w, jnp.float32)
    b = jnp.asarray(b, jnp.float32)

    B, D = x.shape
    F_, O = w.shape
    assert F_ == D + D * D, "w must have input_dim + input_dim**2 rows (order=2)"

    # --- padded / tiled sizes -------------------------------------------------
    d_pad = _round_up(D, 8)               # per-group K width (sublane aligned)
    o_pad = _round_up(O, 128)             # lane-dense output

    tm = block_m if block_m is not None else min(512, _round_up(B, 8))
    assert tm % 8 == 0
    b_pad = _round_up(B, tm)

    tn = block_n if block_n is not None else min(512, o_pad)
    assert tn % 128 == 0
    o_pad = _round_up(o_pad, tn)

    n_groups = D + 1                      # reduction grid axis (last)

    # --- operand preparation (padding only; all compute is in the kernel) ----
    x_p = jnp.pad(x, ((0, b_pad - B), (0, d_pad - D)))

    w_lin = w[:D][None]                   # (1, D, O)  linear rows
    w_quad = w[D:].reshape(D, D, O)       # (D, D, O)  group i = rows D+i*D : D+(i+1)*D
    w_g = jnp.concatenate([w_lin, w_quad], axis=0)            # (D+1, D, O)
    w_g = jnp.pad(w_g, ((0, 0), (0, d_pad - D), (0, o_pad - O)))
    w_p = w_g.reshape(n_groups * d_pad, o_pad)                 # ((D+1)*D_pad, O_pad)

    b_p = jnp.pad(b.reshape(1, O), ((0, 0), (0, o_pad - O)))   # (1, O_pad)

    grid = (b_pad // tm, o_pad // tn, n_groups)

    # Tile VMEM budget: 2x x-tile + 2x w-tile + 2x bias + out + 2x(acc/out).
    est = 4 * (2 * tm * d_pad + 2 * d_pad * tn + 2 * tn + 3 * tm * tn)
    vmem_limit = int(min(max(2 * est, 8 * 1024 * 1024), 32 * 1024 * 1024))

    kernel = functools.partial(quad_reg_kernel, compute_dtype=compute_dtype)

    out_p = pl.pallas_call(
        kernel,
        out_shape=jax.ShapeDtypeStruct((b_pad, o_pad), jnp.float32),
        grid_spec=pltpu.PrefetchScalarGridSpec(
            num_scalar_prefetch=0,
            grid=grid,
            in_specs=[
                # x tile: resident across O tiles and the reduction axis.
                pl.BlockSpec((tm, d_pad), lambda i, j, k: (i, 0)),
                # w group block: streams along the reduction axis.
                pl.BlockSpec((d_pad, tn), lambda i, j, k: (k, j)),
                # bias: resident along the reduction axis.
                pl.BlockSpec((1, tn), lambda i, j, k: (0, j)),
            ],
            out_specs=pl.BlockSpec((tm, tn), lambda i, j, k: (i, j)),
            scratch_shapes=[pltpu.VMEM((tm, tn), jnp.float32)],
        ),
        compiler_params=pltpu.CompilerParams(
            dimension_semantics=("parallel", "parallel", "arbitrary"),
            vmem_limit_bytes=vmem_limit,
        ),
    )(x_p, w_p, b_p)

    return out_p[:B, :O]


def reference(x, w, b):
    B, D = x.shape
    x2 = jnp.einsum('bi,bj->bij', x, x).reshape(B, D * D)
    return jnp.concatenate([x, x2], axis=1) @ w + b


if __name__ == "__main__":
    key = jax.random.PRNGKey(0)

    def run_case(batch, input_dim, output_dim, **kwargs):
        kx, kwt, kb = jax.random.split(
            jax.random.fold_in(key, batch * 131 + input_dim * 7 + output_dim), 3)
        x = jax.random.normal(kx, (batch, input_dim), dtype=jnp.float32)
        w = jax.random.normal(
            kwt, (input_dim + input_dim * input_dim, output_dim),
            dtype=jnp.float32) * 0.1
        b = jax.random.normal(kb, (output_dim,), dtype=jnp.float32) * 0.1

        out = jax.block_until_ready(quad_regression(x, w, b, **kwargs))
        ref = reference(x, w, b)
        assert out.shape == (batch, output_dim)
        assert jnp.allclose(out, ref, atol=1e-4, rtol=1e-4), (
            f"mismatch vs reference for shape ({batch},{input_dim},{output_dim})")

    # Module-consistent tiny shape (parameters init'd like nn.Parameter shapes).
    run_case(batch=8, input_dim=4, output_dim=3)
    # Larger case exercising multiple batch tiles, padding, and the grid.
    run_case(batch=300, input_dim=12, output_dim=5, block_m=128)

    print("KERNEL_OK")
</pallas_src>

<mosaic_0001>
module attributes {stable_mosaic.version = 11 : i64} {
  func.func @quad_reg_kernel(%arg0: i32, %arg1: i32, %arg2: i32, %arg3: memref<8x8xf32, #tpu.memory_space<vmem>>, %arg4: memref<8x128xf32, #tpu.memory_space<vmem>>, %arg5: memref<1x128xf32, #tpu.memory_space<vmem>>, %arg6: memref<8x128xf32, #tpu.memory_space<vmem>>, %arg7: memref<8x128xf32, #tpu.memory_space<vmem>>) attributes {dimension_semantics = [#tpu.dimension_semantics<parallel>, #tpu.dimension_semantics<parallel>, #tpu.dimension_semantics<arbitrary>], iteration_bounds = array<i64: 1, 1, 5>, scalar_prefetch = 0 : i64, scratch_operands = 1 : i64, tpu.core_type = #tpu.core_type<tc>, window_params = [{transform_indices = @transform_0, window_bounds = array<i64: 8, 8>}, {transform_indices = @transform_1, window_bounds = array<i64: 8, 128>}, {transform_indices = @transform_2, window_bounds = array<i64: 1, 128>}, {transform_indices = @transform_3, window_bounds = array<i64: 8, 128>}]} {
    %c0_i32 = arith.constant 0 : i32
    %0 = arith.cmpi eq, %arg2, %c0_i32 : i32
    %1 = arith.extui %0 : i1 to i32
    %c0_i32_0 = arith.constant 0 : i32
    %2 = arith.cmpi ne, %1, %c0_i32_0 : i32
    scf.if %2 {
      %cst_13 = arith.constant 0.000000e+00 : f32
      %25 = vector.broadcast %cst_13 : f32 to vector<8x128xf32>
      %c0_14 = arith.constant 0 : index
      %c0_15 = arith.constant 0 : index
      %26 = vector.load %arg7[%c0_14, %c0_15] : memref<8x128xf32, #tpu.memory_space<vmem>>, vector<8x128xf32>
      tpu.vector_store %arg7[%c0_14, %c0_15], %25 {strides = array<i32>} : memref<8x128xf32, #tpu.memory_space<vmem>>, vector<8x128xf32>,
    } else {
    }
    %c0 = arith.constant 0 : index
    %c0_1 = arith.constant 0 : index
    %3 = vector.load %arg3[%c0, %c0_1] : memref<8x8xf32, #tpu.memory_space<vmem>>, vector<8x8xf32>
    %4 = tpu.iota {dimensions = array<i32: 1>} : vector<8x8xi32>
    %c1_i32 = arith.constant 1 : i32
    %5 = arith.subi %arg2, %c1_i32 : i32
    %6 = vector.broadcast %5 : i32 to vector<8x8xi32>
    %7 = arith.cmpi eq, %4, %6 : vector<8x8xi32>
    %cst = arith.constant 0.000000e+00 : f32
    %8 = vector.broadcast %cst : f32 to vector<8x8xf32>
    %9 = arith.select %7, %3, %8 : vector<8x8xi1>, vector<8x8xf32>
    %cst_2 = arith.constant dense<0.000000e+00> : vector<8xf32>
    %10 = vector.multi_reduction <add>, %9, %cst_2 [1] : vector<8x8xf32> to vector<8xf32>
    %11 = vector.shape_cast %10 : vector<8xf32> to vector<8x1xf32>
    %c0_i32_3 = arith.constant 0 : i32
    %12 = arith.cmpi eq, %arg2, %c0_i32_3 : i32
    %cst_4 = arith.constant 1.000000e+00 : f32
    %13 = vector.broadcast %cst_4 : f32 to vector<8x1xf32>
    %14 = arith.select %12, %13, %11 : vector<8x1xf32>
    %15 = vector.broadcast %14 : vector<8x1xf32> to vector<8x8xf32>
    %16 = arith.mulf %3, %15 : vector<8x8xf32>
    %c0_5 = arith.constant 0 : index
    %c0_6 = arith.constant 0 : index
    %17 = vector.load %arg7[%c0_5, %c0_6] : memref<8x128xf32, #tpu.memory_space<vmem>>, vector<8x128xf32>
    %c0_7 = arith.constant 0 : index
    %c0_8 = arith.constant 0 : index
    %18 = vector.load %arg4[%c0_7, %c0_8] : memref<8x128xf32, #tpu.memory_space<vmem>>, vector<8x128xf32>
    %cst_9 = arith.constant dense<0.000000e+00> : vector<8x128xf32>
    %19 = tpu.matmul %16, %18, %cst_9 {dimension_numbers = #tpu.dot_dimension_numbers<[1], [0], [0], [1], [0, 0, 1, 1], [], []>} : vector<8x8xf32>, vector<8x128xf32>, vector<8x128xf32> -> vector<8x128xf32>
    %20 = arith.addf %17, %19 : vector<8x128xf32>
    %c0_10 = arith.constant 0 : index
    %c0_11 = arith.constant 0 : index
    %21 = vector.load %arg7[%c0_10, %c0_11] : memref<8x128xf32, #tpu.memory_space<vmem>>, vector<8x128xf32>
    tpu.vector_store %arg7[%c0_10, %c0_11], %20 {strides = array<i32>} : memref<8x128xf32, #tpu.memory_space<vmem>>, vector<8x128xf32>,
    %c4_i32 = arith.constant 4 : i32
    %22 = arith.cmpi eq, %arg2, %c4_i32 : i32
    %23 = arith.extui %22 : i1 to i32
    %c0_i32_12 = arith.constant 0 : i32
    %24 = arith.cmpi ne, %23, %c0_i32_12 : i32
    scf.if %24 {
      %c0_13 = arith.constant 0 : index
      %c0_14 = arith.constant 0 : index
      %25 = vector.load %arg7[%c0_13, %c0_14] : memref<8x128xf32, #tpu.memory_space<vmem>>, vector<8x128xf32>
      %c0_15 = arith.constant 0 : index
      %c0_16 = arith.constant 0 : index
      %26 = vector.load %arg5[%c0_15, %c0_16] : memref<1x128xf32, #tpu.memory_space<vmem>>, vector<1x128xf32>
      %27 = vector.broadcast %26 : vector<1x128xf32> to vector<8x128xf32>
      %28 = arith.addf %25, %27 : vector<8x128xf32>
      %c0_17 = arith.constant 0 : index
      %c0_18 = arith.constant 0 : index
      %29 = vector.load %arg6[%c0_17, %c0_18] : memref<8x128xf32, #tpu.memory_space<vmem>>, vector<8x128xf32>
      tpu.vector_store %arg6[%c0_17, %c0_18], %28 {strides = array<i32>} : memref<8x128xf32, #tpu.memory_space<vmem>>, vector<8x128xf32>,
    } else {
    }
    return
  }
  func.func @transform_0(%arg0: i32, %arg1: i32, %arg2: i32) -> (i32, i32) {
    %c0_i32 = arith.constant 0 : i32
    %c0_i32_0 = arith.constant 0 : i32
    return %arg0, %c0_i32 : i32, i32
  }
  func.func @transform_1(%arg0: i32, %arg1: i32, %arg2: i32) -> (i32, i32) {
    %c0_i32 = arith.constant 0 : i32
    return %arg2, %arg1 : i32, i32
  }
  func.func @transform_2(%arg0: i32, %arg1: i32, %arg2: i32) -> (i32, i32) {
    %c0_i32 = arith.constant 0 : i32
    %c0_i32_0 = arith.constant 0 : i32
    return %c0_i32, %arg1 : i32, i32
  }
  func.func @transform_3(%arg0: i32, %arg1: i32, %arg2: i32) -> (i32, i32) {
    %c0_i32 = arith.constant 0 : i32
    return %arg0, %arg1 : i32, i32
  }
}

</mosaic_0001>

<bundles_post_ra>
// kernel: tpu_custom_call.1
= control target key start
LH: loop header
LB: loop body
LE: loop exit
PB: predicated region body
PF: predicated region fallthrough
CT: control target
= control target key end

     0   :  { %8 = vsyncpa [#allocation4], 0  ;;  %s790_s0 = inlined_call_operand.hbm [shape: f32[8,8], index: 0, kind: input, shape index: {}]   ;;  %s791_s1 = inlined_call_operand.hbm [shape: f32[40,128], index: 1, kind: input, shape index: {}]   ;;  %s792_s2 = inlined_call_operand.vmem [shape: f32[1,128], index: 2, kind: input, shape index: {}]   ;;  %s793_s3 = inlined_call_operand.hbm [shape: f32[8,128], index: 3, kind: output, shape index: {}]  }
   0x1   :  { %9 = vsyncpa [#allocation7], 0 }
   0x2   :  { %11 = vsyncpa [#allocation7 + $0x1], 0 }
   0x3   :  { %12 = vsyncpa [#allocation5], 0  ;;  %s668_s12 = smov 0   ;;  %s670_s13 = smov 0  }
   0x4   :  { %s672_s14 = smov 0   ;;  %s674_s15 = smov 0  }
   0x5   :  { %s676_s16 = smov 0   ;;  %s678_s17 = smov 0  }
   0x6 LB: > { %s404_s18 = sadd.s32 4294967295, %s643_s17   ;;  %p85_p0 = scmp.ne.s32.totalorder %s627_s13, %s623_s12  ;;  %s643_s17 = sphi %s678_s17, %s18_s17   ;;  %s639_s16 = sphi %s676_s16, %s802_s16   ;;  %s635_s15 = sphi %s674_s15, %s801_s15   ;;  %s631_s14 = sphi %s672_s14, %s800_s14   ;;  %s627_s13 = sphi %s670_s13, %s799_s13   ;;  %s623_s12 = sphi %s668_s12, %s798_s12  }
   0x7   : > { %p700_p1 = scmp.eq.s32.totalorder %s404_s18, 0  ;;  %p405_p2 = scmp.ge.s32.totalorder %s643_s17, 1 }
   0x8   : > { %p150_p3 = scmp.lt.s32.totalorder %s643_s17, 6  ;;  %s164_s23 = sshll.u32 %s790_s0, 4  ;;  %s165_s23 = int_to_ptr.hbm [resolvable:$true] %s164_s23 }
   0x9   : > { %p708_p4 = por %p700_p1, %p85_p0  ;;  %s645_s25 = smov [#allocation3]  }
   0xa   : > { %p715_p5 = pnand %p405_p2, %p150_p3  ;;  %s166_s26 = sshll.u32 %s645_s25, 4  ;;  %s167_s26 = int_to_ptr.vmem [resolvable:$true] %s166_s26 }
   0xb   : > { %s30_s27 = sadd.s32 1, %s639_s16  ;;  %p79_p9 = scmp.ne.s32.totalorder %s631_s14, %s627_s13 }
   0xc   : > { %p432_p6 = pneg %p715_p5  ;;  %p31_p8 = scmp.ge.s32.totalorder %s30_s27, 5 }
   0xd   : > { %p80_p10 = scmp.eq.s32.totalorder %s643_s17, 0  ;;  %s72_s28 = sadd.s32 1, %s631_s14 }
   0xe   : > { %p433_p7 = pnand %p432_p6, %p700_p1  ;;  %s804_s27 = smov (%p31_p8, %s30_s27), 0 }
   0xf   : > { %p730_p11 = por %p80_p10, %p79_p9  ;;  %s67_s30 = ssub.s32 %s639_s16, %s804_s27 }
  0x10   : > { %435 = dma.hbm_to_vmem [thread:$0]  (!%p433_p7), %s165_s23, 128, %s167_s26, [#allocation4]  }
  0x11   : > { %s183_s4 = sand.u32 1, %s631_s14   ;;  %p70_p12 = scmp.eq.s32.totalorder %s67_s30, 0 }
  0x12   : > { %p441_p13 = scmp.lt.s32.totalorder %s643_s17, 5  ;;  %s409_s5 = sshll.u32 %s183_s4, 3 }
  0x13   : > { %s410_s6 = sshll.u32 %s639_s16, 3  ;;  %s187_s12 = scalar_lea.vmem [#allocation6], %s409_s5 }
  0x14   : > { %s740_s7 = scalar_select %p70_p12, %s631_s14, %s72_s28  }
  0x15   : > { %s192_s10 = scalar_lea.hbm %s791_s1, %s410_s6  ;;  %s196_s21 = sshll.u32 %s187_s12, 4  ;;  %s197_s21 = int_to_ptr.vmem [resolvable:$true] %s196_s21 }
  0x16   : > { %s194_s11 = sshll.u32 %s192_s10, 4  ;;  %p437_p0 = pnand %p441_p13, %p730_p11  ;;  %s195_s11 = int_to_ptr.hbm [resolvable:$true] %s194_s11 }
  0x17   : > { %s184_s22 = scalar_lea.sflag [#allocation7], %s183_s4  ;;  %205 = sbr.rel (%p715_p5) target bundleno = 313 (0x139), region = 32 }
  0x18   : > { %439 = dma.hbm_to_vmem [thread:$0]  (!%p437_p0), %s195_s11, 128, %s197_s21, %s184_s22  }
  0x1c   : > { %610 = dma.done.wait (%p700_p1), [#allocation4], 128  }
  0x1d   : > { %612 = vsyncadd (%p700_p1), [#allocation4], 4294967168  ;;  %s212_s23 = sand.u32 1, %s627_s13  }
  0x1e   : > { %s413_s25 = sshll.u32 %s212_s23, 3  ;;  %s213_s26 = scalar_lea.sflag [#allocation7], %s212_s23 }
  0x1f   : > { %s216_s28 = scalar_lea.vmem [#allocation6], %s413_s25 }
  0x20   : > { %614 = dma.done.wait (%p708_p4), %s213_s26, 128  }
  0x21   : > { %616 = vsyncadd (%p708_p4), %s213_s26, 4294967168  ;;  %p241_p2 = scmp.eq.s32.totalorder %s635_s15, 0  ;;  %p414_p3 = scmp.ne.s32.totalorder %s635_s15, 0 }
  0x23   : > { %244 = sbr.rel (%p414_p3) target bundleno = 42 (0x2a), region = 44 }
  0x28   : > { %v646_v0 = vmov 0.0  }
  0x29   : > { %245 = vst [vmem:[#allocation2] sm:$0xff] %v646_v0 }
  0x2a PF: > { %v247_v1 = vlaneseq  ;;  %s415_s19 = sadd.s32 4294967295, %s635_s15  ;;  %v246_v3 = vld [vmem:[#allocation3] sm:$0xff]  ;;  %vm253_vm0 = vcmask 64512   ;;  %v263_v7 = vld [vmem:[%s216_s28] sm:$0xff]  ;;  %p417_p1 = scmp.ne.s32.totalorder %s635_s15, 4 }
  0x2b   : > { %v250_v2 = vstv %s415_s19  ;;  %282 = vmatpush.msra.mxu0 %v263_v7  ;;  %s257_s20 = scalar_select %p241_p2, 1, 0 }
  0x2c   : > { %v248_v4 = vand.u32 127, %v247_v1 }
  0x2d   : > { %v258_v8 = vstv %s257_s20 }
  0x2e   : > { %vm251_vm1 = vcmp.eq.s32.totalorder %v248_v4, %v250_v2  ;;  %vm259_vm2 = vcmp.eq.s32.totalorder %v258_v8, 1 }
  0x2f   : > { %v252_v5 = vsel %vm251_vm1, %v246_v3, 0.0 }
  0x30   : > { %v254_v6 = vsel %vm253_vm0, %v252_v5, 0.0  ;;  %v262_v12 = vld [vmem:[#allocation2] sm:$0xff] }
  0x31   : > { %255 = vadd.xlane.f32.xlu0 %v254_v6 }
  0xa4   : > { %v256_v9 = vpop.xlane.xlu0 %255 }
  0xa5   : > { %v260_v10 = vsel %vm259_vm2, 1.0, %v256_v9 }
  0xa6   : > { %v261_v11 = vmul.f32 %v260_v10, %v246_v3 }
  0xa8   : > { %416 = vmatmul.msk.f32.vlgmr.msra.gmra.mxu0 %vm253_vm0, %v261_v11 }
 0x124   : > { %292 = sbr.rel (%p417_p1) target bundleno = 307 (0x133), region = 48 }
 0x125   : > { %v284_v13 = vpop.f32.mrf.mxu0 }
 0x126   : > { %v287_v14 = vadd.f32 %v284_v13, %v262_v12 }
 0x128   : > { %288 = vst [vmem:[#allocation2] sm:$0xff] %v287_v14 }
 0x129   : > { %v496_v16 = vld [vmem:[%s792_s2] ss:$0 sm:$0xff] }
 0x12f   : > { %v293_v15 = vld [vmem:[#allocation2] sm:$0xff] }
 0x130   : > { %v298_v17 = vadd.f32 %v496_v16, %v293_v15 }
 0x132   : > { %299 = vst [vmem:[#allocation8] sm:$0xff] %v298_v17 }
 0x133 PF: > { %p443_p4 = scmp.eq.s32.totalorder %s404_s18, 4  ;;  %s311_s5 = sshll.u32 %s793_s3, 4  ;;  %s312_s5 = int_to_ptr.hbm [resolvable:$true] %s311_s5 }
 0x134   : > { %s647_s6 = smov [#allocation8]  }
 0x135   : > { %s309_s8 = sshll.u32 %s647_s6, 4  ;;  %s310_s8 = int_to_ptr.vmem [resolvable:$true] %s309_s8 }
 0x136   : > { %429 = dma.vmem_to_hbm [thread:$0]  (%p443_p4), %s310_s8, 128, %s312_s5, [#allocation5]  }
 0x137   : > { %618 = dma.done.wait (%p443_p4), [#allocation5], 128  }
 0x138   : > { %620 = vsyncadd (%p443_p4), [#allocation5], 4294967168 }
 0x139 PF: > { %s18_s17 = sadd.s32 1, %s643_s17   ;;  %s798_s12 = smov %s627_s13 }
 0x13a   : > { %p15_p5 = scmp.ge.s32.totalorder %s18_s17, 7   ;;  %s799_s13 = smov %s631_s14 }
 0x13b   : > { %s800_s14 = smov %s740_s7  ;;  %s801_s15 = smov %s639_s16 }
 0x13c   : > { %s802_s16 = smov %s804_s27  ;;  %17 = sbr.rel (!%p15_p5) target bundleno = 6 (0x6), region = 87 }
 0x141   :  { %325 = vsyncpa [#allocation4], 1 }
 0x142   :  { %327 = vsyncpa [#allocation4 + $0x1], 1 }
 0x143   :  { %328 = vsyncpa [#allocation7], 1 }
 0x144   :  { %330 = vsyncpa [#allocation7 + $0x1], 1 }
 0x145   :  { %331 = vsyncpa [#allocation5], 1 }
 0x146   :  { %333 = vsyncpa [#allocation5 + $0x1], 1 }

</bundles_post_ra>
